<compile_context>
chip_gen: v5e
topology: v5e:2x2
jax: 0.10.0
libtpu: 0.0.40
codegen_flags: <defaults>
</compile_context>

<pallas_src>
import functools
import numpy as np
import jax
import jax.numpy as jnp
from jax.experimental import pallas as pl
from jax.experimental.pallas import tpu as pltpu

_EPS = 1e-6  # nn.CosineSimilarity(eps=1e-6)


def _bs_factor(batch_size, n_parts):
    if n_parts == 4:
        bs = 4 * batch_size
        factor = 10 * n_parts if batch_size != 12 else n_parts
    elif n_parts == 3:
        bs = 4 * batch_size + 5
        factor = n_parts + 2
    elif n_parts == 6:
        bs = 5 * batch_size + 4
        factor = 2
    else:
        raise ValueError("n_parts must be 3, 4 or 6")
    return bs, factor


def _round_up(x, m):
    return ((x + m - 1) // m) * m


def _build_tables(batch_size, n_parts):
    """Host-side glue: replicate the PyTorch index loop as dense mask tables.

    Returns a single packed table of shape (3*t_p, bs_p):
        rows [0      :   t_p) : per-term denominator mask (pos_oh @ dm, pre-fused)
        rows [t_p    : 2*t_p) : one-hot of the term's i index
        rows [2*t_p  : 3*t_p) : one-hot of the term's j index
    Padded rows/columns are exactly zero, so padded embedding rows contribute
    nothing even though exp() is evaluated on the full padded Gram matrix.
    """
    bs, factor = _bs_factor(batch_size, n_parts)

    def wrap(v):
        return v % bs if v >= bs else v

    den_masks = []      # one denominator mask per contributing pos_index
    terms = []          # (pos_slot, i, j) for each compute_symmetrical_loss call
    for pos in range(bs):
        if pos % (3 * n_parts) >= n_parts:
            continue
        i1, i2, i3, i4, i5, i6 = [wrap(pos + k * n_parts) for k in range(6)]
        ind_l = [wrap(pos + k * n_parts) for k in range(factor * n_parts)]
        den_idx = np.delete(np.arange(bs), ind_l)
        mask = np.zeros((bs,), np.float32)
        mask[den_idx] = 1.0
        p_slot = len(den_masks)
        den_masks.append(mask)
        for (a, b) in [(i1, i2), (i2, i3), (i1, i4), (i4, i5),
                       (i5, i6), (i2, i5), (i3, i6)]:
            terms.append((p_slot, a, b))

    T = len(terms)
    bs_p = _round_up(max(bs, 128), 128)   # lane-facing dim -> lane-dense
    t_p = _round_up(max(T, 8), 8)         # sublane-facing dim -> sublane-aligned

    term_den = np.zeros((t_p, bs_p), np.float32)   # == pos_oh @ dm (pre-fused)
    pi_oh = np.zeros((t_p, bs_p), np.float32)
    pj_oh = np.zeros((t_p, bs_p), np.float32)
    for t, (p, i, j) in enumerate(terms):
        term_den[t, :bs] = den_masks[p]
        pi_oh[t, i] = 1.0
        pj_oh[t, j] = 1.0
    tables = np.concatenate([term_den, pi_oh, pj_oh], axis=0)   # (3*t_p, bs_p)
    return bs, bs_p, t_p, tables


def _gloss_kernel(x_ref, tab_ref, out_ref, *, t_p, inv_temp, out_scale, eps):
    x = x_ref[...]                                            # (BSP, DP) f32
    nsq = jnp.sum(x * x, axis=1, keepdims=True)               # (BSP, 1)
    inv_norm = jax.lax.rsqrt(jnp.maximum(nsq, eps * eps))
    xn = x * inv_norm                                         # unit rows (pad rows -> 0)
    xs = x * (inv_norm * inv_temp)                            # fold 1/temp into LHS
    # s[i,j] = cos(x_i, x_j) / temp   (NT contraction on MXU, f32 accumulate)
    s = jax.lax.dot_general(xs, xn, (((1,), (1,)), ((), ())),
                            preferred_element_type=jnp.float32)
    # Stabilize: subtract the max possible exponent (cos<=1). Cancels in the
    # log-ratio below, but keeps exp() in range for any temp_fac.
    e = jnp.exp(s - inv_temp)                                 # (BSP, BSP)

    td_pi = tab_ref[0:2 * t_p, :]                             # [term_den ; pi]
    pi = tab_ref[t_p:2 * t_p, :]
    pj = tab_ref[2 * t_p:3 * t_p, :]

    # One fused mask matmul:
    #   prod[:t_p]      = term_den @ e  -> denominator sums vs every row
    #   prod[t_p:2t_p]  = pi       @ e  -> row i of e for every term
    prod = jnp.dot(td_pi, e, preferred_element_type=jnp.float32)   # (2*TP, BSP)
    pr = prod[0:t_p, :]
    ne = prod[t_p:2 * t_p, :]

    num = jnp.sum(ne * pj, axis=1, keepdims=True)   # exp((cos(xi,xj)-1)/temp)
    ri = jnp.sum(pr * pi, axis=1, keepdims=True)    # denominator sum vs row i
    rj = jnp.sum(pr * pj, axis=1, keepdims=True)    # denominator sum vs row j
    valid = jnp.sum(pi, axis=1, keepdims=True)      # 1 for real terms, 0 for pad

    num_s = jnp.where(valid > 0, num, 1.0)
    # -log(n/(n+Ri)) - log(n/(n+Rj)) == log((n+Ri)*(n+Rj) / n^2)   (single log)
    loss_t = jnp.log((num_s + ri) * (num_s + rj) / (num_s * num_s))
    total = jnp.sum(loss_t * valid, axis=0, keepdims=True)    # (1, 1)
    out_ref[...] = total * out_scale


def global_loss_d(reg_pred, *, batch_size, n_parts, temp_fac):
    reg_pred = jnp.asarray(reg_pred, jnp.float32)
    bs, bs_p, t_p, tables = _build_tables(batch_size, n_parts)
    assert reg_pred.shape[0] == bs, f"reg_pred must have {bs} rows"
    d = reg_pred.shape[1]
    d_p = _round_up(max(d, 128), 128)                 # lane-dense feature dim
    x_p = jnp.zeros((bs_p, d_p), jnp.float32).at[:bs, :d].set(reg_pred)

    kernel = functools.partial(
        _gloss_kernel,
        t_p=t_p,
        inv_temp=1.0 / float(temp_fac),
        out_scale=1.0 / (6.0 * float(batch_size)),
        eps=_EPS)

    vmem = pltpu.MemorySpace.VMEM
    out = pl.pallas_call(
        kernel,
        out_shape=jax.ShapeDtypeStruct((1, 1), jnp.float32),
        in_specs=[pl.BlockSpec(memory_space=vmem)] * 2,
        out_specs=pl.BlockSpec(memory_space=vmem),
    )(x_p, jnp.asarray(tables))
    return out[0, 0]


# ---------------- pure numpy reference (mirrors the PyTorch forward) ----------------
def _cos_np(a, b, eps=1e-6):
    w12 = np.sum(a * b, axis=1)
    w1 = np.sum(a * a, axis=1)
    w2 = np.sum(b * b, axis=1)
    return w12 / np.sqrt(np.clip(w1 * w2, eps * eps, None))


def _reference_loss(reg_pred, batch_size, n_parts, temp_fac):
    x = np.asarray(reg_pred, np.float64)
    bs, factor = _bs_factor(batch_size, n_parts)
    wrap = lambda v: v % bs if v >= bs else v
    net = 0.0
    for pos in range(bs):
        i1, i2, i3, i4, i5, i6 = [wrap(pos + k * n_parts) for k in range(6)]
        ind_l = [wrap(pos + k * n_parts) for k in range(factor * n_parts)]
        den_idx = np.delete(np.arange(bs), ind_l)
        xd = x[den_idx]

        def sym(a, b):
            xa, xb = x[a:a + 1], x[b:b + 1]
            num = _cos_np(xa, xb) / temp_fac
            da = _cos_np(xa, xd) / temp_fac
            db = _cos_np(xb, xd) / temp_fac
            l1 = -np.log(np.exp(num) / (np.exp(num) + np.sum(np.exp(da))))
            l2 = -np.log(np.exp(num) / (np.exp(num) + np.sum(np.exp(db))))
            return float((l1 + l2)[0])

        if pos % (3 * n_parts) < n_parts:
            for (a, b) in [(i1, i2), (i2, i3), (i1, i4), (i4, i5),
                           (i5, i6), (i2, i5), (i3, i6)]:
                net += sym(a, b)
    return net / (6.0 * batch_size)


if __name__ == "__main__":
    config = {"batch_size": 3, "n_parts": 4, "temp_fac": 0.1}
    bs, _ = _bs_factor(config["batch_size"], config["n_parts"])   # bs = 12
    D = 32
    key = jax.random.PRNGKey(0)
    reg_pred = jax.random.normal(key, (bs, D), dtype=jnp.float32)

    out = global_loss_d(reg_pred,
                        batch_size=config["batch_size"],
                        n_parts=config["n_parts"],
                        temp_fac=config["temp_fac"])
    out = jax.block_until_ready(out)

    ref = _reference_loss(np.asarray(reg_pred), config["batch_size"],
                          config["n_parts"], config["temp_fac"])
    np.testing.assert_allclose(float(out), ref, rtol=2e-3, atol=2e-3)
    print("KERNEL_OK")
</pallas_src>

<mosaic_0001>
module attributes {stable_mosaic.version = 11 : i64} {
  func.func @_gloss_kernel(%arg0: memref<128x128xf32, #tpu.memory_space<vmem>>, %arg1: memref<96x128xf32, #tpu.memory_space<vmem>>, %arg2: memref<1x1xf32, #tpu.memory_space<vmem>>) attributes {dimension_semantics = [], scalar_prefetch = 0 : i64, scratch_operands = 0 : i64, tpu.core_type = #tpu.core_type<tc>} {
    %c0 = arith.constant 0 : index
    %c0_0 = arith.constant 0 : index
    %0 = vector.load %arg0[%c0, %c0_0] : memref<128x128xf32, #tpu.memory_space<vmem>>, vector<128x128xf32>
    %1 = arith.mulf %0, %0 : vector<128x128xf32>
    %cst = arith.constant dense<0.000000e+00> : vector<128xf32>
    %2 = vector.multi_reduction <add>, %1, %cst [1] : vector<128x128xf32> to vector<128xf32>
    %3 = vector.shape_cast %2 : vector<128xf32> to vector<128x1xf32>
    %cst_1 = arith.constant 9.99999996E-13 : f32
    %4 = vector.broadcast %cst_1 : f32 to vector<128x1xf32>
    %5 = arith.maximumf %3, %4 : vector<128x1xf32>
    %6 = math.rsqrt %5 : vector<128x1xf32>
    %7 = vector.broadcast %6 : vector<128x1xf32> to vector<128x128xf32>
    %8 = arith.mulf %0, %7 : vector<128x128xf32>
    %cst_2 = arith.constant 1.000000e+01 : f32
    %9 = vector.broadcast %cst_2 : f32 to vector<128x1xf32>
    %10 = arith.mulf %6, %9 : vector<128x1xf32>
    %11 = vector.broadcast %10 : vector<128x1xf32> to vector<128x128xf32>
    %12 = arith.mulf %0, %11 : vector<128x128xf32>
    %cst_3 = arith.constant dense<0.000000e+00> : vector<128x128xf32>
    %13 = tpu.matmul %12, %8, %cst_3 {dimension_numbers = #tpu.dot_dimension_numbers<[1], [1], [0], [0], [0, 0, 1, 0], [], []>} : vector<128x128xf32>, vector<128x128xf32>, vector<128x128xf32> -> vector<128x128xf32>
    %cst_4 = arith.constant 1.000000e+01 : f32
    %14 = vector.broadcast %cst_4 : f32 to vector<128x128xf32>
    %15 = arith.subf %13, %14 : vector<128x128xf32>
    %16 = math.exp %15 : vector<128x128xf32>
    %c0_5 = arith.constant 0 : index
    %c0_6 = arith.constant 0 : index
    %17 = vector.load %arg1[%c0_5, %c0_6] : memref<96x128xf32, #tpu.memory_space<vmem>>, vector<64x128xf32>
    %c32 = arith.constant 32 : index
    %c0_7 = arith.constant 0 : index
    %18 = vector.load %arg1[%c32, %c0_7] : memref<96x128xf32, #tpu.memory_space<vmem>>, vector<32x128xf32>
    %c64 = arith.constant 64 : index
    %c0_8 = arith.constant 0 : index
    %19 = vector.load %arg1[%c64, %c0_8] : memref<96x128xf32, #tpu.memory_space<vmem>>, vector<32x128xf32>
    %cst_9 = arith.constant dense<0.000000e+00> : vector<64x128xf32>
    %20 = tpu.matmul %17, %16, %cst_9 {dimension_numbers = #tpu.dot_dimension_numbers<[1], [0], [0], [1], [0, 0, 1, 1], [], []>} : vector<64x128xf32>, vector<128x128xf32>, vector<64x128xf32> -> vector<64x128xf32>
    %21 = vector.extract_strided_slice %20 {offsets = [0, 0], sizes = [32, 128], strides = [1, 1]} : vector<64x128xf32> to vector<32x128xf32>
    %22 = vector.extract_strided_slice %20 {offsets = [32, 0], sizes = [32, 128], strides = [1, 1]} : vector<64x128xf32> to vector<32x128xf32>
    %23 = arith.mulf %22, %19 : vector<32x128xf32>
    %cst_10 = arith.constant dense<0.000000e+00> : vector<32xf32>
    %24 = vector.multi_reduction <add>, %23, %cst_10 [1] : vector<32x128xf32> to vector<32xf32>
    %25 = vector.shape_cast %24 : vector<32xf32> to vector<32x1xf32>
    %26 = arith.mulf %21, %18 : vector<32x128xf32>
    %cst_11 = arith.constant dense<0.000000e+00> : vector<32xf32>
    %27 = vector.multi_reduction <add>, %26, %cst_11 [1] : vector<32x128xf32> to vector<32xf32>
    %28 = vector.shape_cast %27 : vector<32xf32> to vector<32x1xf32>
    %29 = arith.mulf %21, %19 : vector<32x128xf32>
    %cst_12 = arith.constant dense<0.000000e+00> : vector<32xf32>
    %30 = vector.multi_reduction <add>, %29, %cst_12 [1] : vector<32x128xf32> to vector<32xf32>
    %31 = vector.shape_cast %30 : vector<32xf32> to vector<32x1xf32>
    %cst_13 = arith.constant dense<0.000000e+00> : vector<32xf32>
    %32 = vector.multi_reduction <add>, %18, %cst_13 [1] : vector<32x128xf32> to vector<32xf32>
    %33 = vector.shape_cast %32 : vector<32xf32> to vector<32x1xf32>
    %cst_14 = arith.constant 0.000000e+00 : f32
    %34 = vector.broadcast %cst_14 : f32 to vector<32x1xf32>
    %35 = arith.cmpf ogt, %33, %34 : vector<32x1xf32>
    %cst_15 = arith.constant 1.000000e+00 : f32
    %36 = vector.broadcast %cst_15 : f32 to vector<32x1xf32>
    %37 = arith.select %35, %25, %36 : vector<32x1xi1>, vector<32x1xf32>
    %38 = arith.addf %37, %28 : vector<32x1xf32>
    %39 = arith.addf %37, %31 : vector<32x1xf32>
    %40 = arith.mulf %38, %39 : vector<32x1xf32>
    %41 = arith.mulf %37, %37 : vector<32x1xf32>
    %42 = arith.divf %40, %41 : vector<32x1xf32>
    %43 = math.log %42 : vector<32x1xf32>
    %44 = arith.mulf %43, %33 : vector<32x1xf32>
    %cst_16 = arith.constant dense<0.000000e+00> : vector<1xf32>
    %45 = vector.multi_reduction <add>, %44, %cst_16 [0] : vector<32x1xf32> to vector<1xf32>
    %46 = vector.shape_cast %45 : vector<1xf32> to vector<1x1xf32>
    %cst_17 = arith.constant 0.055555556 : f32
    %47 = vector.broadcast %cst_17 : f32 to vector<1x1xf32>
    %48 = arith.mulf %46, %47 : vector<1x1xf32>
    %c0_18 = arith.constant 0 : index
    %c0_19 = arith.constant 0 : index
    %49 = vector.load %arg2[%c0_18, %c0_19] : memref<1x1xf32, #tpu.memory_space<vmem>>, vector<1x1xf32>
    tpu.vector_store %arg2[%c0_18, %c0_19], %48 {strides = array<i32>} : memref<1x1xf32, #tpu.memory_space<vmem>>, vector<1x1xf32>,
    return
  }
}

</mosaic_0001>

<bundles_post_ra>
// kernel: tpu_custom_call.1
= control target key start
LH: loop header
LB: loop body
LE: loop exit
PB: predicated region body
PF: predicated region fallthrough
CT: control target
= control target key end

     0   :  { %7 = vsyncpa [#allocation3], 0  ;;  %s1304_s0 = inlined_call_operand.hbm [shape: f32[128,128], index: 0, kind: input, shape index: {}]   ;;  %s1305_s1 = inlined_call_operand.hbm [shape: f32[96,128], index: 1, kind: input, shape index: {}]   ;;  %s1306_s2 = inlined_call_operand.hbm [shape: f32[1,1], index: 2, kind: output, shape index: {}]  }
   0x1   :  { %8 = vsyncpa [#allocation6], 0 }
   0x2   :  { %9 = vsyncpa [#allocation4], 0  ;;  %s14_s11 = sshll.u32 %s1304_s0, 4  ;;  %s879_s12 = smov [#allocation2]   ;;  %s15_s11 = int_to_ptr.hbm [resolvable:$true] %s14_s11 }
   0x3   :  { %s16_s13 = sshll.u32 %s879_s12, 4  ;;  %s27_s16 = sshll.u32 %s1305_s1, 4  ;;  %s17_s13 = int_to_ptr.vmem [resolvable:$true] %s16_s13  ;;  %s28_s16 = int_to_ptr.hbm [resolvable:$true] %s27_s16 }
   0x4   :  { %s880_s17 = smov 128   ;;  %s881_s18 = smov 8  }
   0x5   :  { %22 = dma.hbm_to_vmem [thread:$0]  %s15_s11, 2048, %s17_s13, [#allocation3], %s880_s17, %s880_s17, %s881_s18  }
   0x6   :  { %s882_s19 = smov [#allocation5]  }
   0x7   :  { %s29_s20 = sshll.u32 %s882_s19, 4  ;;  %s30_s20 = int_to_ptr.vmem [resolvable:$true] %s29_s20 }
   0x8   :  { %35 = dma.hbm_to_vmem [thread:$0]  %s28_s16, 1536, %s30_s20, [#allocation6], %s880_s17, %s880_s17, %s881_s18  }
   0x9   :  { %873 = dma.done.wait [#allocation3], 2048  }
   0xa   :  { %874 = vsyncadd [#allocation3], 4294965248 }
   0xb   :  { %875 = dma.done.wait [#allocation6], 1536  }
   0xc   :  { %876 = vsyncadd [#allocation6], 4294965760  ;;  %v905_v0 = vld [vmem:[#allocation2 + $0x78] sm:$0xff]  ;;  %v907_v1 = vld [vmem:[#allocation2 + $0x68] sm:$0xff]  ;;  %s883_s0 = smov [#allocation7]   ;;  %s657_s23 = sshll.u32 %s1306_s2, 4  ;;  %s658_s23 = int_to_ptr.hbm [resolvable:$true] %s657_s23 }
   0xd   :  { %v909_v2 = vld [vmem:[#allocation2 + $0x58] sm:$0xff]  ;;  %v75_v3 = vmul.f32 %v905_v0, %v905_v0  ;;  %v73_v4 = vmul.f32 %v907_v1, %v907_v1  ;;  %v917_v6 = vld [vmem:[#allocation2 + $0x70] sm:$0xff]  ;;  %v919_v7 = vld [vmem:[#allocation2 + $0x60] sm:$0xff]  ;;  %s655_s1 = sshll.u32 %s883_s0, 4  ;;  %s656_s1 = int_to_ptr.vmem [resolvable:$true] %s655_s1 }
   0xe   :  { %v71_v5 = vmul.f32 %v909_v2, %v909_v2  ;;  %v921_v8 = vld [vmem:[#allocation2 + $0x50] sm:$0xff]  ;;  %v74_v9 = vmul.f32 %v917_v6, %v917_v6  ;;  %v72_v10 = vmul.f32 %v919_v7, %v919_v7  ;;  %v929_v12 = vld [vmem:[#allocation2 + $0x48] sm:$0xff]  ;;  %v931_v13 = vld [vmem:[#allocation2 + $0x40] sm:$0xff] }
   0xf   :  { %106 = vadd.xlane.f32.xlu0 %v75_v3  ;;  %102 = vadd.xlane.f32.xlu1 %v73_v4  ;;  %v70_v11 = vmul.f32 %v921_v8, %v921_v8  ;;  %v933_v14 = vld [vmem:[#allocation2 + $0x38] sm:$0xff]  ;;  %v69_v15 = vmul.f32 %v929_v12, %v929_v12  ;;  %v68_v16 = vmul.f32 %v931_v13, %v931_v13  ;;  %v941_v18 = vld [vmem:[#allocation2 + $0x30] sm:$0xff]  ;;  %v943_v19 = vld [vmem:[#allocation2 + $0x28] sm:$0xff] }
  0x10   :  { %98 = vadd.xlane.f32.xlu2 %v71_v5  ;;  %v67_v17 = vmul.f32 %v933_v14, %v933_v14  ;;  %v945_v20 = vld [vmem:[#allocation2 + $0x20] sm:$0xff]  ;;  %v66_v21 = vmul.f32 %v941_v18, %v941_v18  ;;  %v65_v22 = vmul.f32 %v943_v19, %v943_v19  ;;  %v953_v24 = vld [vmem:[#allocation2 + $0x18] sm:$0xff]  ;;  %v955_v25 = vld [vmem:[#allocation2 + $0x10] sm:$0xff] }
  0x11   :  { %v64_v23 = vmul.f32 %v945_v20, %v945_v20  ;;  %v957_v26 = vld [vmem:[#allocation2 + $0x8] sm:$0xff]  ;;  %v63_v27 = vmul.f32 %v953_v24, %v953_v24  ;;  %v62_v28 = vmul.f32 %v955_v25, %v955_v25  ;;  %v965_v30 = vld [vmem:[#allocation2] sm:$0xff] }
  0x12   :  { %v61_v29 = vmul.f32 %v957_v26, %v957_v26  ;;  %v60_v31 = vmul.f32 %v965_v30, %v965_v30 }
  0x17   :  { %104 = vadd.xlane.f32.xlu0 %v74_v9  ;;  %100 = vadd.xlane.f32.xlu1 %v72_v10 }
  0x18   :  { %96 = vadd.xlane.f32.xlu2 %v70_v11 }
  0x1f   :  { %94 = vadd.xlane.f32.xlu0 %v69_v15  ;;  %92 = vadd.xlane.f32.xlu1 %v68_v16 }
  0x20   :  { %90 = vadd.xlane.f32.xlu2 %v67_v17 }
  0x27   :  { %88 = vadd.xlane.f32.xlu0 %v66_v21  ;;  %86 = vadd.xlane.f32.xlu1 %v65_v22 }
  0x28   :  { %84 = vadd.xlane.f32.xlu2 %v64_v23 }
  0x2f   :  { %82 = vadd.xlane.f32.xlu0 %v63_v27  ;;  %80 = vadd.xlane.f32.xlu1 %v62_v28 }
  0x30   :  { %78 = vadd.xlane.f32.xlu2 %v61_v29 }
  0x37   :  { %76 = vadd.xlane.f32.xlu0 %v60_v31 }
  0x82   :  { %v107_v32 = vpop.xlane.xlu0 %106  ;;  %v103_v33 = vpop.xlane.xlu1 %102 }
  0x83   :  { %v123_v34 = vmax.f32 %v107_v32, 1e-12  ;;  %v969_v35 = vmax.f32 %v103_v33, 1e-12  ;;  %v99_v36 = vpop.xlane.xlu2 %98 }
  0x84   :  { %v972_v37 = vmax.f32 %v99_v36, 1e-12 }
  0x85   :  { %721 = vrsqrt.f32 %v123_v34  ;;  %vm280_vm1 = vweird.f32 %v123_v34  ;;  %vm260_vm3 = vweird.f32 %v969_v35 }
  0x86   :  { %723 = vrsqrt.f32 %v969_v35  ;;  %vm240_vm11 = vweird.f32 %v972_v37 }
  0x87   :  { %725 = vrsqrt.f32 %v972_v37 }
  0x8a   :  { %v105_v38 = vpop.xlane.xlu0 %104  ;;  %v101_v39 = vpop.xlane.xlu1 %100 }
  0x8b   :  { %v722_v40 = vpop.eup %721  ;;  %v122_v41 = vmax.f32 %v105_v38, 1e-12  ;;  %v975_v42 = vmax.f32 %v101_v39, 1e-12  ;;  %v97_v43 = vpop.xlane.xlu2 %96 }
  0x8c   :  { %v977_v44 = vpop.eup %723  ;;  %v275_v45 = vmul.f32 %v722_v40, %v123_v34  ;;  %v979_v46 = vmax.f32 %v97_v43, 1e-12  ;;  %vm281_vm0 = vweird.f32 %v722_v40 }
  0x8d   :  { %v255_v47 = vmul.f32 %v977_v44, %v969_v35  ;;  %727 = vrsqrt.f32 %v122_v41  ;;  %v984_v49 = vpop.eup %725  ;;  %vm282_vm2 = vmor %vm280_vm1, %vm281_vm0  ;;  %vm261_vm5 = vweird.f32 %v977_v44  ;;  %vm270_vm6 = vweird.f32 %v122_v41 }
  0x8e   :  { %v276_v48 = vmul.f32 %v722_v40, %v275_v45  ;;  %729 = vrsqrt.f32 %v975_v42  ;;  %v235_v55 = vmul.f32 %v984_v49, %v972_v37  ;;  %vm250_vm8 = vweird.f32 %v975_v42  ;;  %vm262_vm9 = vmor %vm260_vm3, %vm261_vm5 }
  0x8f   :  { %731 = vrsqrt.f32 %v979_v46  ;;  %v256_v51 = vmul.f32 %v977_v44, %v255_v47  ;;  %vm241_vm12 = vweird.f32 %v984_v49  ;;  %vm230_vm15 = vweird.f32 %v979_v46 }
  0x90   :  { %v277_v50 = vmul.f32 0.5, %v276_v48  ;;  %v236_v5 = vmul.f32 %v984_v49, %v235_v55  ;;  %vm242_vm14 = vmor %vm240_vm11, %vm241_vm12 }
  0x91   :  { %v257_v62 = vmul.f32 0.5, %v256_v51 }
  0x92   :  { %v95_v52 = vpop.xlane.xlu0 %94  ;;  %v93_v53 = vpop.xlane.xlu1 %92  ;;  %v278_v59 = vsub.f32 1.5, %v277_v50  ;;  %v237_v29 = vmul.f32 0.5, %v236_v5 }
  0x93   :  { %v728_v54 = vpop.eup %727  ;;  %v990_v56 = vmax.f32 %v95_v52, 1e-12  ;;  %v992_v57 = vmax.f32 %v93_v53, 1e-12  ;;  %v91_v61 = vpop.xlane.xlu2 %90  ;;  %v258_v16 = vsub.f32 1.5, %v257_v62 }
  0x94   :  { %v994_v58 = vpop.eup %729  ;;  %v265_v60 = vmul.f32 %v728_v54, %v122_v41  ;;  %v1004_v10 = vmax.f32 %v91_v61, 1e-12  ;;  %v279_v15 = vmul.f32 %v722_v40, %v278_v59  ;;  %vm271_vm4 = vweird.f32 %v728_v54 }
  0x95   :  { %v245_v63 = vmul.f32 %v994_v58, %v975_v42  ;;  %733 = vrsqrt.f32 %v990_v56  ;;  %v999_v3 = vpop.eup %731  ;;  %v259_v43 = vmul.f32 %v977_v44, %v258_v16  ;;  %vm272_vm7 = vmor %vm270_vm6, %vm271_vm4  ;;  %v238_v41 = vsub.f32 1.5, %v237_v29 }
  0x96   :  { %v266_v4 = vmul.f32 %v728_v54, %v265_v60  ;;  %735 = vrsqrt.f32 %v992_v57  ;;  %v225_v21 = vmul.f32 %v999_v3, %v979_v46  ;;  %v1009_v23 = vsel %vm282_vm2, %v722_v40, %v279_v15 }
  0x97   :  { %v246_v9 = vmul.f32 %v994_v58, %v245_v63  ;;  %737 = vrsqrt.f32 %v1004_v10  ;;  %v299_v31 = vmul.f32 %v1009_v23, %v905_v0  ;;  %vm251_vm10 = vweird.f32 %v994_v58 }
  0x98   :  { %v267_v11 = vmul.f32 0.5, %v266_v4  ;;  %v226_v39 = vmul.f32 %v999_v3, %v225_v21  ;;  %v1045_v55 = vsel %vm262_vm9, %v977_v44, %v259_v43  ;;  %vm252_vm13 = vmor %vm250_vm8, %vm251_vm10  ;;  %vm231_vm0 = vweird.f32 %v999_v3 }
  0x99   :  { %v247_v17 = vmul.f32 0.5, %v246_v9  ;;  %332 = vmatpush.xpose.msra.mxu0 %v299_v31  ;;  %684 = vmatpush.xpose.msra.mxu2 %v299_v31  ;;  %v297_v61 = vmul.f32 %v1045_v55, %v907_v1  ;;  %v239_v9 = vmul.f32 %v984_v49, %v238_v41  ;;  %vm232_vm1 = vmor %vm230_vm15, %vm231_vm0  ;;  %vm220_vm2 = vweird.f32 %v990_v56 }
  0x9a   :  { %v268_v22 = vsub.f32 1.5, %v267_v11  ;;  %v89_v27 = vpop.xlane.xlu0 %88  ;;  %v87_v33 = vpop.xlane.xlu1 %86  ;;  %685 = vmatpush.xpose.msra.mxu3 %v299_v31  ;;  %v227_v53 = vmul.f32 0.5, %v226_v39  ;;  %vm210_vm4 = vweird.f32 %v992_v57  ;;  %vm200_vm8 = vweird.f32 %v1004_v10 }
  0x9b   :  { %v1011_v28 = vpop.eup %733  ;;  %v1017_v32 = vmax.f32 %v89_v27, 1e-12  ;;  %v248_v38 = vsub.f32 1.5, %v247_v17  ;;  %v1027_v45 = vmax.f32 %v87_v33, 1e-12  ;;  %v85_v51 = vpop.xlane.xlu2 %84 }
  0x9c   :  { %v269_v34 = vmul.f32 %v728_v54, %v268_v22  ;;  %v1019_v36 = vpop.eup %735  ;;  %v215_v40 = vmul.f32 %v1011_v28, %v990_v56  ;;  %v1051_v59 = vmax.f32 %v85_v51, 1e-12  ;;  %v228_v62 = vsub.f32 1.5, %v227_v53 }
  0x9d   :  { %v205_v48 = vmul.f32 %v1019_v36, %v992_v57  ;;  %739 = vrsqrt.f32 %v1017_v32  ;;  %v1041_v52 = vpop.eup %737  ;;  %v249_v35 = vmul.f32 %v994_v58, %v248_v38  ;;  %v1083_v22 = vsel %vm242_vm14, %v984_v49, %v239_v9 }
  0x9e   :  { %v1029_v47 = vsel %vm272_vm7, %v728_v54, %v269_v34  ;;  %v216_v54 = vmul.f32 %v1011_v28, %v215_v40  ;;  %741 = vrsqrt.f32 %v1027_v45  ;;  %v195_v60 = vmul.f32 %v1041_v52, %v1004_v10 }
  0x9f   :  { %v298_v50 = vmul.f32 %v1029_v47, %v917_v6  ;;  %v206_v44 = vmul.f32 %v1019_v36, %v205_v48  ;;  %v1063_v5 = vsel %vm252_vm13, %v994_v58, %v249_v35  ;;  %743 = vrsqrt.f32 %v1051_v59 }
  0xa0   :  { %v217_v63 = vmul.f32 0.5, %v216_v54  ;;  %v196_v58 = vmul.f32 %v1041_v52, %v195_v60  ;;  %v296_v16 = vmul.f32 %v1063_v5, %v919_v7  ;;  %v229_v27 = vmul.f32 %v999_v3, %v228_v62 }
  0xa1   :  { %333 = vmatpush.xpose.msra.mxu0 %v298_v50  ;;  %686 = vmatpush.xpose.msra.mxu2 %v298_v50  ;;  %v207_v42 = vmul.f32 0.5, %v206_v44  ;;  %vm221_vm3 = vweird.f32 %v1011_v28  ;;  %v295_v49 = vmul.f32 %v1083_v22, %v909_v2  ;;  %vm211_vm5 = vweird.f32 %v1019_v36 }
  0xa2   :  { %687 = vmatpush.xpose.msra.mxu3 %v298_v50  ;;  %v83_v4 = vpop.xlane.xlu0 %82  ;;  %v81_v17 = vpop.xlane.xlu1 %80  ;;  %v218_v21 = vsub.f32 1.5, %v217_v63  ;;  %v197_v31 = vmul.f32 0.5, %v196_v58  ;;  %v1099_v43 = vsel %vm232_vm1, %v999_v3, %v229_v27  ;;  %vm222_vm6 = vmor %vm220_vm2, %vm221_vm3  ;;  %vm201_vm9 = vweird.f32 %v1041_v52 }
  0xa3   :  { %v1066_v11 = vpop.eup %739  ;;  %v1074_v15 = vmax.f32 %v83_v4, 1e-12  ;;  %v1088_v29 = vmax.f32 %v81_v17, 1e-12  ;;  %v208_v38 = vsub.f32 1.5, %v207_v42  ;;  %v79_v40 = vpop.xlane.xlu2 %78  ;;  %v294_v51 = vmul.f32 %v1099_v43, %v921_v8  ;;  %vm212_vm7 = vmor %vm210_vm4, %vm211_vm5 }
  0xa4   :  { %v1078_v37 = vpop.eup %741  ;;  %v185_v46 = vmul.f32 %v1066_v11, %v1017_v32  ;;  %v219_v41 = vmul.f32 %v1011_v28, %v218_v21  ;;  %v1112_v50 = vmax.f32 %v79_v40, 1e-12  ;;  %v198_v54 = vsub.f32 1.5, %v197_v31  ;;  %vm202_vm10 = vmor %vm200_vm8, %vm201_vm9 }
  0xa5   :  { %334 = vmatpush.xpose.msra.mxu0 %v297_v61  ;;  %688 = vmatpush.xpose.msra.mxu2 %v297_v61  ;;  %v175_v33 = vmul.f32 %v1078_v37, %v1027_v45  ;;  %745 = vrsqrt.f32 %v1074_v15  ;;  %v1095_v34 = vpop.eup %743  ;;  %v209_v60 = vmul.f32 %v1019_v36, %v208_v38  ;;  %vm190_vm11 = vweird.f32 %v1017_v32 }
  0xa6   :  { %689 = vmatpush.xpose.msra.mxu3 %v297_v61  ;;  %v186_v39 = vmul.f32 %v1066_v11, %v185_v46  ;;  %747 = vrsqrt.f32 %v1088_v29  ;;  %v165_v3 = vmul.f32 %v1095_v34, %v1051_v59  ;;  %v1117_v44 = vsel %vm222_vm6, %v1011_v28, %v219_v41 }
  0xa7   :  { %v176_v48 = vmul.f32 %v1078_v37, %v175_v33  ;;  %749 = vrsqrt.f32 %v1112_v50  ;;  %v293_v63 = vmul.f32 %v1117_v44, %v929_v12  ;;  %v1137_v10 = vsel %vm212_vm7, %v1019_v36, %v209_v60 }
  0xa8   :  { %v187_v35 = vmul.f32 0.5, %v186_v39  ;;  %v166_v28 = vmul.f32 %v1095_v34, %v165_v3  ;;  %v199_v42 = vmul.f32 %v1041_v52, %v198_v54  ;;  %vm191_vm12 = vweird.f32 %v1066_v11 }
  0xa9   :  { %335 = vmatpush.xpose.msra.mxu0 %v296_v16  ;;  %690 = vmatpush.xpose.msra.mxu2 %v296_v16  ;;  %v177_v62 = vmul.f32 0.5, %v176_v48  ;;  %v292_v36 = vmul.f32 %v1137_v10, %v931_v13  ;;  %vm192_vm13 = vmor %vm190_vm11, %vm191_vm12  ;;  %vm180_vm14 = vweird.f32 %v1027_v45  ;;  %vm181_vm15 = vweird.f32 %v1078_v37 }
  0xaa   :  { %691 = vmatpush.xpose.msra.mxu3 %v296_v16  ;;  %v77_v53 = vpop.xlane.xlu0 %76  ;;  %v188_v57 = vsub.f32 1.5, %v187_v35  ;;  %v167_v58 = vmul.f32 0.5, %v166_v28  ;;  %v1149_v46 = vsel %vm202_vm10, %v1041_v52, %v199_v42  ;;  %vm182_vm0 = vmor %vm180_vm14, %vm181_vm15  ;;  %vm170_vm1 = vweird.f32 %v1051_v59 }
  0xab   :  { %v1120_v56 = vpop.eup %745  ;;  %v1126_v61 = vmax.f32 %v77_v53, 1e-12  ;;  %v178_v17 = vsub.f32 1.5, %v177_v62  ;;  %vm171_vm2 = vweird.f32 %v1095_v34  ;;  %vm160_vm4 = vweird.f32 %v1074_v15 }
  0xac   :  { %v1132_v4 = vpop.eup %747  ;;  %v155_v9 = vmul.f32 %v1120_v56, %v1074_v15  ;;  %v189_v32 = vmul.f32 %v1066_v11, %v188_v57  ;;  %v168_v31 = vsub.f32 1.5, %v167_v58  ;;  %vm172_vm3 = vmor %vm170_vm1, %vm171_vm2  ;;  %vm161_vm5 = vweird.f32 %v1120_v56 }
  0xad   :  { %336 = vmatpush.xpose.msra.mxu0 %v295_v49  ;;  %692 = vmatpush.xpose.msra.mxu2 %v295_v49  ;;  %751 = vrsqrt.f32 %v1126_v61  ;;  %v145_v16 = vmul.f32 %v1132_v4, %v1088_v29  ;;  %v1152_v27 = vpop.eup %749  ;;  %v179_v45 = vmul.f32 %v1078_v37, %v178_v17  ;;  %vm162_vm6 = vmor %vm160_vm4, %vm161_vm5  ;;  %vm150_vm7 = vweird.f32 %v1088_v29 }
  0xae   :  { %693 = vmatpush.xpose.msra.mxu3 %v295_v49  ;;  %v156_v21 = vmul.f32 %v1120_v56, %v155_v9  ;;  %v291_v49 = vmul.f32 %v1149_v46, %v933_v14  ;;  %v135_v39 = vmul.f32 %v1152_v27, %v1112_v50  ;;  %v1164_v40 = vsel %vm192_vm13, %v1066_v11, %v189_v32 }
  0xaf   :  { %v146_v33 = vmul.f32 %v1132_v4, %v145_v16  ;;  %v290_v48 = vmul.f32 %v1164_v40, %v941_v18  ;;  %v169_v3 = vmul.f32 %v1095_v34, %v168_v31  ;;  %v1176_v54 = vsel %vm182_vm0, %v1078_v37, %v179_v45 }
  0xb0   :  { %v157_v38 = vmul.f32 0.5, %v156_v21  ;;  %v136_v53 = vmul.f32 %v1152_v27, %v135_v39  ;;  %v289_v35 = vmul.f32 %v1176_v54, %v943_v19  ;;  %vm151_vm8 = vweird.f32 %v1132_v4 }
  0xb1   :  { %337 = vmatpush.xpose.msra.mxu0 %v294_v51  ;;  %694 = vmatpush.xpose.msra.mxu2 %v294_v51  ;;  %v1184_v28 = vsel %vm172_vm3, %v1095_v34, %v169_v3  ;;  %vm152_vm9 = vmor %vm150_vm7, %vm151_vm8  ;;  %vm140_vm10 = vweird.f32 %v1112_v50  ;;  %vm141_vm11 = vweird.f32 %v1152_v27  ;;  %vm130_vm13 = vweird.f32 %v1126_v61 }
  0xb2   :  { %695 = vmatpush.xpose.msra.mxu3 %v294_v51  ;;  %v158_v11 = vsub.f32 1.5, %v157_v38  ;;  %v147_v51 = vmul.f32 0.5, %v146_v33  ;;  %v137_v62 = vmul.f32 0.5, %v136_v53  ;;  %vm142_vm12 = vmor %vm140_vm10, %vm141_vm11  ;;  %v306_v21 = vmul.f32 10.0, %v1164_v40 }
  0xb3   :  { %v1159_v52 = vpop.eup %751  ;;  %v311_v31 = vmul.f32 10.0, %v1083_v22  ;;  %v307_v38 = vmul.f32 10.0, %v1149_v46  ;;  %v312_v39 = vmul.f32 10.0, %v1063_v5 }
  0xb4   :  { %v125_v41 = vmul.f32 %v1159_v52, %v1126_v61  ;;  %v148_v60 = vsub.f32 1.5, %v147_v51  ;;  %v159_v37 = vmul.f32 %v1120_v56, %v158_v11  ;;  %v138_v57 = vsub.f32 1.5, %v137_v62 }
  0xb5   :  { %338 = vmatpush.xpose.msra.mxu0 %v293_v63  ;;  %696 = vmatpush.xpose.msra.mxu2 %v293_v63  ;;  %vm131_vm14 = vweird.f32 %v1159_v52  ;;  %v322_v33 = vmul.f32 %v306_v21, %v941_v18  ;;  %v323_v22 = vmul.f32 %v307_v38, %v933_v14  ;;  %v328_v45 = vmul.f32 %v312_v39, %v919_v7 }
  0xb6   :  { %697 = vmatpush.xpose.msra.mxu3 %v293_v63  ;;  %v126_v59 = vmul.f32 %v1159_v52, %v125_v41  ;;  %v288_v63 = vmul.f32 %v1184_v28, %v945_v20  ;;  %v163_v9 = vsel %vm162_vm6, %v1120_v56, %v159_v37  ;;  %v149_v34 = vmul.f32 %v1132_v4, %v148_v60  ;;  %vm132_vm15 = vmor %vm130_vm13, %vm131_vm14 }
  0xb7   :  { %v287_v42 = vmul.f32 %v163_v9, %v953_v24  ;;  %v139_v16 = vmul.f32 %v1152_v27, %v138_v57  ;;  %v303_v14 = vmul.f32 10.0, %v163_v9  ;;  %v309_v7 = vmul.f32 10.0, %v1117_v44 }
  0xb8   :  { %v127_v15 = vmul.f32 0.5, %v126_v59  ;;  %v153_v58 = vsel %vm152_vm9, %v1132_v4, %v149_v34 }
  0xb9   :  { %339 = vmatpush.xpose.msra.mxu0 %v292_v36  ;;  %698 = vmatpush.xpose.msra.mxu2 %v292_v36  ;;  %v286_v50 = vmul.f32 %v153_v58, %v955_v25  ;;  %v302_v18 = vmul.f32 10.0, %v153_v58 }
  0xba   :  { %699 = vmatpush.xpose.msra.mxu3 %v292_v36  ;;  %v128_v29 = vsub.f32 1.5, %v127_v15  ;;  %v143_v36 = vsel %vm142_vm12, %v1152_v27, %v139_v16 }
  0xbb   :  { %v285_v4 = vmul.f32 %v143_v36, %v957_v26  ;;  %v318_v41 = vmul.f32 %v302_v18, %v955_v25  ;;  %v315_v25 = vmul.f32 10.0, %v1009_v23 }
  0xbc   :  { %v129_v56 = vmul.f32 %v1159_v52, %v128_v29 }
  0xbd   :  { %340 = vmatpush.xpose.msra.mxu0 %v291_v49  ;;  %700 = vmatpush.xpose.msra.mxu2 %v291_v49 }
  0xbe   :  { %701 = vmatpush.xpose.msra.mxu3 %v291_v49  ;;  %v133_v17 = vsel %vm132_vm15, %v1159_v52, %v129_v56  ;;  %v327_v49 = vmul.f32 %v311_v31, %v909_v2  ;;  %v301_v52 = vmul.f32 10.0, %v143_v36  ;;  %v308_v2 = vmul.f32 10.0, %v1137_v10 }
  0xbf   :  { %v300_v61 = vmul.f32 10.0, %v133_v17  ;;  %v284_v32 = vmul.f32 %v133_v17, %v965_v30  ;;  %v325_v10 = vmul.f32 %v309_v7, %v929_v12 }
  0xc0   :  { %v317_v40 = vmul.f32 %v301_v52, %v957_v26  ;;  %v324_v46 = vmul.f32 %v308_v2, %v931_v13  ;;  %v314_v26 = vmul.f32 10.0, %v1029_v47  ;;  %v304_v13 = vmul.f32 10.0, %v1184_v28 }
  0xc1   :  { %341 = vmatpush.xpose.msra.mxu0 %v290_v48  ;;  %702 = vmatpush.xpose.msra.mxu2 %v290_v48  ;;  %v316_v27 = vmul.f32 %v300_v61, %v965_v30  ;;  %v313_v30 = vmul.f32 10.0, %v1045_v55  ;;  %v331_v47 = vmul.f32 %v315_v25, %v905_v0 }
  0xc2   :  { %703 = vmatpush.xpose.msra.mxu3 %v290_v48  ;;  %v319_v48 = vmul.f32 %v303_v14, %v953_v24  ;;  %v330_v55 = vmul.f32 %v314_v26, %v917_v6  ;;  %v320_v3 = vmul.f32 %v304_v13, %v945_v20  ;;  %v305_v6 = vmul.f32 10.0, %v1176_v54 }
  0xc3   :  { %v329_v5 = vmul.f32 %v313_v30, %v907_v1  ;;  %v310_v1 = vmul.f32 10.0, %v1099_v43 }
  0xc4   :  { %v321_v12 = vmul.f32 %v305_v6, %v943_v19 }
  0xc5   :  { %342 = vmatpush.xpose.msra.mxu0 %v289_v35  ;;  %704 = vmatpush.xpose.msra.mxu2 %v289_v35  ;;  %v326_v44 = vmul.f32 %v310_v1, %v921_v8 }
  0xc6   :  { %705 = vmatpush.xpose.msra.mxu3 %v289_v35 }
  0xc9   :  { %343 = vmatpush.xpose.msra.mxu0 %v288_v63  ;;  %706 = vmatpush.xpose.msra.mxu2 %v288_v63 }
  0xca   :  { %707 = vmatpush.xpose.msra.mxu3 %v288_v63 }
  0xcd   :  { %344 = vmatpush.xpose.msra.mxu0 %v287_v42  ;;  %708 = vmatpush.xpose.msra.mxu2 %v287_v42 }
  0xce   :  { %709 = vmatpush.xpose.msra.mxu3 %v287_v42 }
  0xd1   :  { %345 = vmatpush.xpose.msra.mxu0 %v286_v50  ;;  %710 = vmatpush.xpose.msra.mxu2 %v286_v50 }
  0xd2   :  { %711 = vmatpush.xpose.msra.mxu3 %v286_v50 }
  0xd5   :  { %346 = vmatpush.xpose.msra.mxu0 %v285_v4  ;;  %712 = vmatpush.xpose.msra.mxu2 %v285_v4 }
  0xd6   :  { %713 = vmatpush.xpose.msra.mxu3 %v285_v4 }
  0xd9   :  { %347 = vmatpush.xpose.msra.mxu0 %v284_v32  ;;  %714 = vmatpush.xpose.msra.mxu2 %v284_v32 }
  0xda   :  { %715 = vmatpush.xpose.msra.mxu3 %v284_v32 }
  0xdc   :  { %348 = vmatmul.f32.vlgmr.msra.gmra.mxu0 %v316_v27  ;;  %366 = vmatmul.f32.vlgmr.msra.gmra.mxu2 %v322_v33 }
  0xdd   :  { %381 = vmatmul.f32.vlgmr.msra.gmra.mxu3 %v327_v49 }
  0xe4   :  { %351 = vmatmul.f32.gmra.mxu0 %v317_v40  ;;  %369 = vmatmul.f32.gmra.mxu2 %v323_v22 }
  0xe5   :  { %384 = vmatmul.f32.gmra.mxu3 %v328_v45 }
  0xec   :  { %354 = vmatmul.f32.gmra.mxu0 %v318_v41  ;;  %372 = vmatmul.f32.gmra.mxu2 %v324_v46 }
  0xed   :  { %387 = vmatmul.f32.gmra.mxu3 %v329_v5 }
  0xf4   :  { %357 = vmatmul.f32.gmra.mxu0 %v319_v48  ;;  %375 = vmatmul.f32.gmra.mxu2 %v325_v10 }
  0xf5   :  { %390 = vmatmul.f32.gmra.mxu3 %v330_v55 }
  0xfc   :  { %360 = vmatmul.f32.gmra.mxu0 %v320_v3  ;;  %378 = vmatmul.f32.gmra.mxu2 %v326_v44 }
  0xfd   :  { %393 = vmatmul.f32.gmra.mxu3 %v331_v47  ;;  %v449_v47 = vld [vmem:[#allocation5 + $0x20] sm:$0xff] }
  0xfe   :  { %534 = vadd.xlane.f32.xlu1 %v449_v47 }
 0x104   :  { %363 = vmatmul.f32.gmra.mxu0 %v321_v12 }
 0x159   :  { %v1234_v24 = vpop.f32.mrf.mxu0 }
 0x15a   :  { %v668_v48 = vadd.f32 -10.0, %v1234_v24  ;;  %v445_v24 = vld [vmem:[#allocation5] sm:$0xff] }
 0x15c   :  { %v413_v25 = vmul.f32 1.442695, %v668_v48 }
 0x15f   :  { %v367_v11 = vpop.f32.mrf.mxu2 }
 0x160   :  { %v382_v43 = vpop.f32.mrf.mxu3  ;;  %v674_v27 = vadd.f32 -10.0, %v367_v11 }
 0x161   :  { %v1236_v51 = vpop.f32.mrf.mxu0  ;;  %v679_v34 = vadd.f32 -10.0, %v382_v43  ;;  %v450_v43 = vld [vmem:[#allocation5 + $0x28] sm:$0xff] }
 0x162   :  { %v425_v40 = vmul.f32 1.442695, %v674_v27  ;;  %v669_v14 = vadd.f32 -10.0, %v1236_v51  ;;  %536 = vadd.xlane.f32.xlu2 %v450_v43  ;;  %v446_v51 = vld [vmem:[#allocation5 + $0x8] sm:$0xff] }
 0x163   :  { %v435_v16 = vmul.f32 1.442695, %v679_v34 }
 0x164   :  { %v415_v13 = vmul.f32 1.442695, %v669_v14 }
 0x167   :  { %v370_v23 = vpop.f32.mrf.mxu2 }
 0x168   :  { %v385_v20 = vpop.f32.mrf.mxu3  ;;  %v675_v61 = vadd.f32 -10.0, %v370_v23  ;;  %v451_v23 = vld [vmem:[#allocation5 + $0x30] sm:$0xff] }
 0x169   :  { %v355_v53 = vpop.f32.mrf.mxu0  ;;  %v680_v19 = vadd.f32 -10.0, %v385_v20  ;;  %v447_v20 = vld [vmem:[#allocation5 + $0x10] sm:$0xff] }
 0x16a   :  { %v427_v52 = vmul.f32 1.442695, %v675_v61  ;;  %v670_v41 = vadd.f32 -10.0, %v355_v53  ;;  %538 = vadd.xlane.f32.xlu2 %v451_v23  ;;  %v452_v53 = vld [vmem:[#allocation5 + $0x38] sm:$0xff] }
 0x16b   :  { %v437_v42 = vmul.f32 1.442695, %v680_v19  ;;  %540 = vadd.xlane.f32.xlu1 %v452_v53 }
 0x16c   :  { %v417_v10 = vmul.f32 1.442695, %v670_v41 }
 0x16f   :  { %v373_v8 = vpop.f32.mrf.mxu2 }
 0x170   :  { %v388_v59 = vpop.f32.mrf.mxu3  ;;  %v676_v36 = vadd.f32 -10.0, %v373_v8  ;;  %v448_v8 = vld [vmem:[#allocation5 + $0x18] sm:$0xff] }
 0x171   :  { %v358_v35 = vpop.f32.mrf.mxu0  ;;  %v681_v54 = vadd.f32 -10.0, %v388_v59 }
 0x172   :  { %v429_v33 = vmul.f32 1.442695, %v676_v36  ;;  %v671_v18 = vadd.f32 -10.0, %v358_v35 }
 0x173   :  { %v439_v29 = vmul.f32 1.442695, %v681_v54 }
 0x174   :  { %v419_v7 = vmul.f32 1.442695, %v671_v18 }
 0x177   :  { %v376_v60 = vpop.f32.mrf.mxu2 }
 0x178   :  { %v391_v0 = vpop.f32.mrf.mxu3  ;;  %v677_v50 = vadd.f32 -10.0, %v376_v60 }
 0x179   :  { %v682_v62 = vadd.f32 -10.0, %v391_v0  ;;  %v361_v57 = vpop.f32.mrf.mxu0 }
 0x17a   :  { %v431_v21 = vmul.f32 1.442695, %v677_v50  ;;  %v672_v22 = vadd.f32 -10.0, %v361_v57 }
 0x17b   :  { %v441_v15 = vmul.f32 1.442695, %v682_v62  ;;  %v453_v62 = vld [vmem:[#allocation5 + $0x40] sm:$0xff] }
 0x17c   :  { %v421_v46 = vmul.f32 1.442695, %v672_v22 }
 0x17f   :  { %v379_v9 = vpop.f32.mrf.mxu2 }
 0x180   :  { %v394_v28 = vpop.f32.mrf.mxu3  ;;  %v678_v58 = vadd.f32 -10.0, %v379_v9 }
 0x181   :  { %v683_v37 = vadd.f32 -10.0, %v394_v28  ;;  %v364_v32 = vpop.f32.mrf.mxu0 }
 0x182   :  { %v433_v4 = vmul.f32 1.442695, %v678_v58  ;;  %v673_v38 = vadd.f32 -10.0, %v364_v32 }
 0x183   :  { %v443_v63 = vmul.f32 1.442695, %v683_v37  ;;  %v454_v37 = vld [vmem:[#allocation5 + $0x48] sm:$0xff] }
 0x184   :  { %v423_v2 = vmul.f32 1.442695, %v673_v38 }
 0x185   :  { %753 = vpow2.f32 %v443_v63  ;;  %v455_v63 = vld [vmem:[#allocation5 + $0x50] sm:$0xff] }
 0x186   :  { %755 = vpow2.f32 %v441_v15 }
 0x187   :  { %757 = vpow2.f32 %v439_v29  ;;  %v456_v29 = vld [vmem:[#allocation5 + $0x58] sm:$0xff] }
 0x188   :  { %759 = vpow2.f32 %v437_v42 }
 0x189   :  { %761 = vpow2.f32 %v435_v16 }
 0x18a   :  { %763 = vpow2.f32 %v433_v4 }
 0x18b   :  { %v754_v56 = vpop.eup %753  ;;  %765 = vpow2.f32 %v431_v21  ;;  %v1240_v21 = vpop.xlane.xlu1 %534 }
 0x18c   :  { %457 = vmatpush.msra.mxu1 %v754_v56  ;;  %v756_v17 = vpop.eup %755  ;;  %767 = vpow2.f32 %v429_v33  ;;  %vm542_vm0 = vcmp.gt.f32.partialorder %v1240_v21, 0.0 }
 0x18d   :  { %v758_v31 = vpop.eup %757  ;;  %769 = vpow2.f32 %v427_v52 }
 0x18e   :  { %458 = vmatpush.msra.mxu1 %v756_v17  ;;  %v760_v49 = vpop.eup %759  ;;  %771 = vpow2.f32 %v425_v40 }
 0x18f   :  { %v762_v39 = vpop.eup %761  ;;  %773 = vpow2.f32 %v423_v2 }
 0x190   :  { %459 = vmatpush.msra.mxu1 %v758_v31  ;;  %v764_v45 = vpop.eup %763  ;;  %775 = vpow2.f32 %v421_v46 }
 0x191   :  { %v766_v30 = vpop.eup %765  ;;  %777 = vpow2.f32 %v419_v7 }
 0x192   :  { %460 = vmatpush.msra.mxu1 %v760_v49  ;;  %v768_v5 = vpop.eup %767  ;;  %779 = vpow2.f32 %v417_v10 }
 0x193   :  { %v770_v26 = vpop.eup %769  ;;  %781 = vpow2.f32 %v415_v13 }
 0x194   :  { %461 = vmatpush.msra.mxu1 %v762_v39  ;;  %v772_v55 = vpop.eup %771  ;;  %783 = vpow2.f32 %v413_v25 }
 0x195   :  { %v774_v1 = vpop.eup %773 }
 0x196   :  { %462 = vmatpush.msra.mxu1 %v764_v45  ;;  %v776_v3 = vpop.eup %775 }
 0x197   :  { %v778_v44 = vpop.eup %777 }
 0x198   :  { %463 = vmatpush.msra.mxu1 %v766_v30  ;;  %v780_v6 = vpop.eup %779 }
 0x199   :  { %v782_v12 = vpop.eup %781 }
 0x19a   :  { %464 = vmatpush.msra.mxu1 %v768_v5  ;;  %v784_v11 = vpop.eup %783 }
 0x19c   :  { %465 = vmatpush.msra.mxu1 %v770_v26 }
 0x19e   :  { %466 = vmatpush.msra.mxu1 %v772_v55 }
 0x1a0   :  { %467 = vmatpush.msra.mxu1 %v774_v1 }
 0x1a2   :  { %468 = vmatpush.msra.mxu1 %v776_v3 }
 0x1a4   :  { %469 = vmatpush.msra.mxu1 %v778_v44 }
 0x1a6   :  { %470 = vmatpush.msra.mxu1 %v780_v6 }
 0x1a8   :  { %471 = vmatpush.msra.mxu1 %v782_v12 }
 0x1aa   :  { %472 = vmatpush.msra.mxu1 %v784_v11 }
 0x1ab   :  { %473 = vmatmul.f32.vlgmr.msra.gmra.mxu1 %v445_v24 }
 0x1b3   :  { %476 = vmatmul.f32.gmra.mxu1 %v446_v51 }
 0x1bb   :  { %479 = vmatmul.f32.gmra.mxu1 %v447_v20 }
 0x1c3   :  { %482 = vmatmul.f32.gmra.mxu1 %v448_v8 }
 0x1cb   :  { %485 = vmatmul.f32.gmra.mxu1 %v449_v47 }
 0x1d3   :  { %488 = vmatmul.f32.gmra.mxu1 %v450_v43 }
 0x1d5   :  { %v1245_v27 = vpop.xlane.xlu2 %536 }
 0x1d6   :  { %vm543_vm1 = vcmp.gt.f32.partialorder %v1245_v27, 0.0 }
 0x1db   :  { %491 = vmatmul.f32.gmra.mxu1 %v451_v23 }
 0x1dd   :  { %v1248_v40 = vpop.xlane.xlu2 %538 }
 0x1de   :  { %v1242_v32 = vpop.xlane.xlu1 %540  ;;  %vm544_vm2 = vcmp.gt.f32.partialorder %v1248_v40, 0.0 }
 0x1df   :  { %vm545_vm3 = vcmp.gt.f32.partialorder %v1242_v32, 0.0 }
 0x1e3   :  { %494 = vmatmul.f32.gmra.mxu1 %v452_v53 }
 0x228   :  { %v474_v59 = vpop.f32.mrf.mxu1 }
 0x229   :  { %v510_v50 = vmul.f32 %v474_v59, %v449_v47  ;;  %v522_v4 = vmul.f32 %v474_v59, %v453_v62 }
 0x230   :  { %v477_v0 = vpop.f32.mrf.mxu1 }
 0x231   :  { %v511_v34 = vmul.f32 %v477_v0, %v450_v43  ;;  %v523_v36 = vmul.f32 %v477_v0, %v454_v37 }
 0x238   :  { %v480_v35 = vpop.f32.mrf.mxu1 }
 0x239   :  { %v512_v16 = vmul.f32 %v480_v35, %v451_v23  ;;  %v524_v61 = vmul.f32 %v480_v35, %v455_v63 }
 0x240   :  { %v483_v60 = vpop.f32.mrf.mxu1 }
 0x241   :  { %v525_v56 = vmul.f32 %v483_v60, %v456_v29  ;;  %v513_v17 = vmul.f32 %v483_v60, %v452_v53 }
 0x248   :  { %v486_v28 = vpop.f32.mrf.mxu1 }
 0x249   :  { %v498_v54 = vmul.f32 %v486_v28, %v453_v62 }
 0x24b   :  { %502 = vadd.xlane.f32.xlu0 %v498_v54 }
 0x250   :  { %v489_v19 = vpop.f32.mrf.mxu1 }
 0x251   :  { %v499_v15 = vmul.f32 %v489_v19, %v454_v37 }
 0x253   :  { %504 = vadd.xlane.f32.xlu1 %v499_v15 }
 0x258   :  { %v492_v57 = vpop.f32.mrf.mxu1 }
 0x259   :  { %v500_v9 = vmul.f32 %v492_v57, %v455_v63 }
 0x25b   :  { %516 = vadd.xlane.f32.xlu1 %v511_v34  ;;  %506 = vadd.xlane.f32.xlu0 %v500_v9 }
 0x260   :  { %v495_v42 = vpop.f32.mrf.mxu1 }
 0x261   :  { %v501_v58 = vmul.f32 %v495_v42, %v456_v29 }
 0x263   :  { %518 = vadd.xlane.f32.xlu1 %v512_v16  ;;  %514 = vadd.xlane.f32.xlu0 %v510_v50 }
 0x264   :  { %508 = vadd.xlane.f32.xlu2 %v501_v58 }
 0x26b   :  { %532 = vadd.xlane.f32.xlu1 %v525_v56  ;;  %528 = vadd.xlane.f32.xlu0 %v523_v36 }
 0x26c   :  { %526 = vadd.xlane.f32.xlu2 %v522_v4 }
 0x273   :  { %520 = vadd.xlane.f32.xlu0 %v513_v17 }
 0x274   :  { %530 = vadd.xlane.f32.xlu2 %v524_v61 }
 0x2be   :  { %v503_v31 = vpop.xlane.xlu0 %502 }
 0x2bf   :  { %v546_v33 = vsel %vm542_vm0, %v503_v31, 1.0 }
 0x2c0   :  { %v562_v49 = vmul.f32 %v546_v33, %v546_v33 }
 0x2c2   :  { %785 = vrcp.f32 %v562_v49  ;;  %v577_v43 = vand.u32 2147483648, %v562_v49  ;;  %vm571_vm8 = vweird.f32 %v562_v49  ;;  %v575_v20 = vand.u32 2147483647, %v562_v49 }
 0x2c4   :  { %v578_v63 = vor.u32 1.1754944e-38, %v577_v43  ;;  %vm576_vm11 = vcmp.eq.f32.partialorder %v575_v20, 8.507059e+37 }
 0x2c6   :  { %v505_v52 = vpop.xlane.xlu1 %504 }
 0x2c7   :  { %v547_v38 = vsel %vm543_vm1, %v505_v52, 1.0 }
 0x2c8   :  { %v563_v39 = vmul.f32 %v547_v38, %v547_v38  ;;  %v786_v22 = vpop.eup %785 }
 0x2c9   :  { %v567_v30 = vmul.f32 %v786_v22, %v562_v49  ;;  %vm572_vm5 = vweird.f32 %v786_v22 }
 0x2ca   :  { %787 = vrcp.f32 %v563_v39  ;;  %v592_v6 = vand.u32 2147483648, %v563_v39  ;;  %vm586_vm6 = vweird.f32 %v563_v39  ;;  %v590_v11 = vand.u32 2147483647, %v563_v39  ;;  %vm1272_vm9 = vmor %vm571_vm8, %vm572_vm5 }
 0x2cb   :  { %v568_v7 = vsub.f32 1.0, %v567_v30 }
 0x2cc   :  { %v593_v59 = vor.u32 1.1754944e-38, %v592_v6  ;;  %vm591_vm10 = vcmp.eq.f32.partialorder %v590_v11, 8.507059e+37 }
 0x2cd   :  { %v569_v1 = vmul.f32 %v786_v22, %v568_v7 }
 0x2ce   :  { %v507_v45 = vpop.xlane.xlu0 %506  ;;  %v517_v41 = vpop.xlane.xlu1 %516 }
 0x2cf   :  { %v1251_v18 = vsel %vm544_vm2, %v507_v45, 1.0  ;;  %v570_v24 = vadd.f32 %v786_v22, %v569_v1  ;;  %v551_v53 = vadd.f32 %v547_v38, %v517_v41 }
 0x2d0   :  { %v788_v2 = vpop.eup %787  ;;  %v1255_v46 = vmul.f32 %v1251_v18, %v1251_v18 }
 0x2d1   :  { %v582_v5 = vmul.f32 %v788_v2, %v563_v39  ;;  %vm587_vm4 = vweird.f32 %v788_v2  ;;  %v574_v28 = vsel %vm1272_vm9, %v786_v22, %v570_v24 }
 0x2d2   :  { %789 = vrcp.f32 %v1255_v46  ;;  %vm1266_vm7 = vmor %vm586_vm6, %vm587_vm4  ;;  %v579_v42 = vsel %vm576_vm11, %v578_v63, %v574_v28  ;;  %vm601_vm13 = vweird.f32 %v1255_v46  ;;  %v605_v4 = vand.u32 2147483647, %v1255_v46 }
 0x2d3   :  { %v583_v14 = vsub.f32 1.0, %v582_v5  ;;  %v607_v17 = vand.u32 2147483648, %v1255_v46  ;;  %vm648_vm4 = vcmask 0  }
 0x2d5   :  { %v584_v10 = vmul.f32 %v788_v2, %v583_v14  ;;  %v608_v5 = vor.u32 1.1754944e-38, %v607_v17 }
 0x2d6   :  { %v515_v26 = vpop.xlane.xlu0 %514  ;;  %v519_v44 = vpop.xlane.xlu1 %518 }
 0x2d7   :  { %v509_v48 = vpop.xlane.xlu2 %508  ;;  %v585_v47 = vadd.f32 %v788_v2, %v584_v10  ;;  %v550_v62 = vadd.f32 %v546_v33, %v515_v26  ;;  %v552_v49 = vadd.f32 %v1251_v18, %v519_v44 }
 0x2d8   :  { %v1259_v55 = vpop.eup %789  ;;  %v549_v13 = vsel %vm545_vm3, %v509_v48, 1.0  ;;  %vm606_vm3 = vcmp.eq.f32.partialorder %v605_v4, 8.507059e+37 }
 0x2d9   :  { %v597_v25 = vmul.f32 %v1259_v55, %v1255_v46  ;;  %v1263_v3 = vmul.f32 %v549_v13, %v549_v13  ;;  %v589_v8 = vsel %vm1266_vm7, %v788_v2, %v585_v47  ;;  %vm602_vm12 = vweird.f32 %v1259_v55 }
 0x2da   :  { %v594_v9 = vsel %vm591_vm10, %v593_v59, %v589_v8  ;;  %vm1288_vm15 = vmor %vm601_vm13, %vm602_vm12 }
 0x2db   :  { %791 = vrcp.f32 %v1263_v3  ;;  %v598_v12 = vsub.f32 1.0, %v597_v25  ;;  %v622_v36 = vand.u32 2147483648, %v1263_v3  ;;  %vm616_vm0 = vweird.f32 %v1263_v3 }
 0x2dd   :  { %v599_v37 = vmul.f32 %v1259_v55, %v598_v12  ;;  %v623_v46 = vor.u32 1.1754944e-38, %v622_v36 }
 0x2de   :  { %v529_v23 = vpop.xlane.xlu0 %528  ;;  %v533_v16 = vpop.xlane.xlu1 %532 }
 0x2df   :  { %v555_v0 = vadd.f32 %v547_v38, %v529_v23  ;;  %v527_v60 = vpop.xlane.xlu2 %526  ;;  %v600_v56 = vadd.f32 %v1259_v55, %v599_v37  ;;  %v557_v52 = vadd.f32 %v549_v13, %v533_v16 }
 0x2e0   :  { %v554_v54 = vadd.f32 %v546_v33, %v527_v60  ;;  %v620_v33 = vand.u32 2147483647, %v1263_v3 }
 0x2e1   :  { %v792_v19 = vpop.eup %791  ;;  %v559_v15 = vmul.f32 %v555_v0, %v551_v53  ;;  %v604_v2 = vsel %vm1288_vm15, %v1259_v55, %v600_v56 }
 0x2e2   :  { %v612_v57 = vmul.f32 %v792_v19, %v1263_v3  ;;  %v558_v34 = vmul.f32 %v554_v54, %v550_v62  ;;  %vm617_vm14 = vweird.f32 %v792_v19  ;;  %vm621_vm2 = vcmp.eq.f32.partialorder %v620_v33, 8.507059e+37 }
 0x2e3   :  { %v595_v29 = vmul.f32 %v594_v9, %v559_v15  ;;  %vm618_vm1 = vmor %vm616_vm0, %vm617_vm14  ;;  %v609_v48 = vsel %vm606_vm3, %v608_v5, %v604_v2 }
 0x2e4   :  { %v613_v58 = vsub.f32 1.0, %v612_v57  ;;  %v580_v50 = vmul.f32 %v579_v42, %v558_v34 }
 0x2e5   :  { %793 = vlog2.f32 %v595_v29 }
 0x2e6   :  { %v521_v61 = vpop.xlane.xlu0 %520  ;;  %v614_v31 = vmul.f32 %v792_v19, %v613_v58  ;;  %795 = vlog2.f32 %v580_v50 }
 0x2e7   :  { %v553_v38 = vadd.f32 %v549_v13, %v521_v61  ;;  %v531_v22 = vpop.xlane.xlu2 %530 }
 0x2e8   :  { %v615_v45 = vadd.f32 %v792_v19, %v614_v31  ;;  %v556_v30 = vadd.f32 %v1251_v18, %v531_v22 }
 0x2e9   :  { %v561_v41 = vmul.f32 %v557_v52, %v553_v38 }
 0x2ea   :  { %v619_v14 = vsel %vm618_vm1, %v792_v19, %v615_v45  ;;  %v560_v7 = vmul.f32 %v556_v30, %v552_v49 }
 0x2eb   :  { %v624_v26 = vsel %vm621_vm2, %v623_v46, %v619_v14  ;;  %v794_v10 = vpop.eup %793 }
 0x2ec   :  { %v625_v13 = vmul.f32 %v624_v26, %v561_v41  ;;  %v610_v1 = vmul.f32 %v609_v48, %v560_v7  ;;  %v796_v25 = vpop.eup %795  ;;  %v629_v3 = vmul.f32 0.6931472, %v794_v10 }
 0x2ed   :  { %v627_v55 = vmul.f32 0.6931472, %v796_v25 }
 0x2ee   :  { %797 = vlog2.f32 %v625_v13  ;;  %v635_v18 = vmul.f32 %v629_v3, %v1245_v27 }
 0x2ef   :  { %799 = vlog2.f32 %v610_v1  ;;  %v634_v47 = vmul.f32 %v627_v55, %v1240_v21 }
 0x2f1   :  { %v638_v11 = vadd.f32 %v635_v18, %v634_v47 }
 0x2f4   :  { %v798_v44 = vpop.eup %797 }
 0x2f5   :  { %v800_v6 = vpop.eup %799  ;;  %v633_v12 = vmul.f32 0.6931472, %v798_v44 }
 0x2f6   :  { %v631_v24 = vmul.f32 0.6931472, %v800_v6 }
 0x2f7   :  { %v637_v51 = vmul.f32 %v633_v12, %v1242_v32 }
 0x2f8   :  { %v636_v43 = vmul.f32 %v631_v24, %v1248_v40 }
 0x2fa   :  { %v639_v23 = vadd.f32 %v638_v11, %v636_v43 }
 0x2fc   :  { %v640_v20 = vadd.f32 %v639_v23, %v637_v51 }
 0x2fe   :  { %v641_v53 = vrot.slane %v640_v20, 4 }
 0x300   :  { %v642_v8 = vadd.f32 %v641_v53, %v640_v20 }
 0x302   :  { %v643_v59 = vrot.slane %v642_v8, 2 }
 0x304   :  { %v644_v0 = vadd.f32 %v643_v59, %v642_v8 }
 0x306   :  { %v645_v35 = vrot.slane %v644_v0, 1 }
 0x308   :  { %v646_v21 = vadd.f32 %v645_v35, %v644_v0 }
 0x30a   :  { %v647_v27 = vmul.f32 0.055555556, %v646_v21 }
 0x30c   :  { %649 = vst.msk [vmem:[#allocation7] sm:$0x1] %vm648_vm4, %v647_v27 }
 0x30d   :  { %660 = dma.vmem_to_hbm [thread:$0]  %s656_s1, 16, %s658_s23, [#allocation4]  }
 0x30e   :  { %877 = dma.done.wait [#allocation4], 16  }
 0x30f   :  { %878 = vsyncadd [#allocation4], 4294967280 }
 0x310   :  { %665 = vsyncpa [#allocation3], 1 }
 0x311   :  { %666 = vsyncpa [#allocation6], 1 }
 0x312   :  { %667 = vsyncpa [#allocation4], 1 }

</bundles_post_ra>
